<compile_context>
chip_gen: v7x
topology: tpu7x:2x2x1
jax: 0.10.0
libtpu: 0.0.40
codegen_flags: <defaults>
</compile_context>

<pallas_src>
import math

import jax
import jax.numpy as jnp
from jax.experimental import pallas as pl
from jax.experimental.pallas import tpu as pltpu


def make_decoder_kernel(num_layers: int, hidden_size: int, batch: int, vocab_padded: int):
    L, H, B, Vp = num_layers, hidden_size, batch, vocab_padded

    def _step(ids_ref, state_in_ref, emb_ref, w0_ref, wrest_ref, b_ref,
              wout_ref, bout_ref, pred_ref, state_out_ref):
        t = pl.program_id(0)

        # Carry the packed recurrent state in the resident output block (constant index_map).
        @pl.when(t == 0)
        def _():
            state_out_ref[...] = state_in_ref[...]

        # ---- fused one-hot MXU embedding gather ----
        ids = ids_ref[0]                                              # (B, 1) int32
        lane = jax.lax.broadcasted_iota(jnp.int32, (B, Vp), 1)
        onehot = (lane == ids).astype(emb_ref.dtype)                  # (B, Vp) bf16
        x = jnp.dot(onehot, emb_ref[...],
                    preferred_element_type=jnp.float32)               # (B, E) f32
        # TODO(synk): nn.Dropout on the embedding is identity in eval mode.

        # packed state lanes: [h_0 | ... | h_{L-1} | c_0 | ... | c_{L-1}]
        state = state_out_ref[...]                                    # (B, 2*L*H) f32

        h_news, c_news = [], []
        for l in range(L):
            h_prev = state[:, l * H:(l + 1) * H]                      # (B, H)
            c_prev = state[:, (L + l) * H:(L + l + 1) * H]            # (B, H)
            w = w0_ref[...] if l == 0 else wrest_ref[l - 1]           # (in_l + H, 4H) bf16
            b = b_ref[l]                                              # (1, 4H) f32

            # single fused MXU matmul per layer: [x, h_prev] @ [W_ih^T ; W_hh^T]
            xh = jnp.concatenate([x, h_prev], axis=1).astype(w.dtype)
            gates = jnp.dot(xh, w, preferred_element_type=jnp.float32) + b   # (B, 4H) f32

            # one full-vreg sigmoid + one full-vreg tanh; select tanh on the g lanes
            lane_g = jax.lax.broadcasted_iota(jnp.int32, gates.shape, 1)
            is_g = (lane_g >= 2 * H) & (lane_g < 3 * H)
            act = jnp.where(is_g, jnp.tanh(gates), jax.nn.sigmoid(gates))

            i = act[:, 0 * H:1 * H]
            f = act[:, 1 * H:2 * H]
            g = act[:, 2 * H:3 * H]
            o = act[:, 3 * H:4 * H]
            c_new = f * c_prev + i * g
            h_new = o * jnp.tanh(c_new)
            h_news.append(h_new)
            c_news.append(c_new)
            x = h_new
            # TODO(synk): inter-layer LSTM dropout is identity in eval mode.

        # one lane-dense (B, 2*L*H) store; stays VMEM-resident for the next grid step
        state_out_ref[...] = jnp.concatenate(h_news + c_news, axis=1)

        # final linear (bf16 MXU, f32 accumulate)
        logits = jnp.dot(x.astype(wout_ref.dtype), wout_ref[...],
                         preferred_element_type=jnp.float32) + bout_ref[...]
        # nn.LogSoftmax(dim=1) on the (1, B, O) tensor == log-softmax over the *batch* axis.
        m = jnp.max(logits, axis=0, keepdims=True)
        z = logits - m
        lse = jnp.log(jnp.sum(jnp.exp(z), axis=0, keepdims=True))
        pred_ref[0] = z - lse

    if L > 1:
        def kernel(ids_ref, state_in_ref, emb_ref, w0_ref, wrest_ref, b_ref,
                   wout_ref, bout_ref, pred_ref, state_out_ref):
            _step(ids_ref, state_in_ref, emb_ref, w0_ref, wrest_ref, b_ref,
                  wout_ref, bout_ref, pred_ref, state_out_ref)
    else:
        def kernel(ids_ref, state_in_ref, emb_ref, w0_ref, b_ref,
                   wout_ref, bout_ref, pred_ref, state_out_ref):
            _step(ids_ref, state_in_ref, emb_ref, w0_ref, None, b_ref,
                  wout_ref, bout_ref, pred_ref, state_out_ref)
    return kernel


def prepare_decoder(params, matmul_dtype=jnp.bfloat16):
    """Hoisted weight prep.  Call ONCE per model; reuse the result for every decode step."""
    L = len(params["w_ih"])
    V, E = params["embedding"].shape
    Vp = ((V + 127) // 128) * 128                                   # pad vocab to 128 lanes
    emb = jnp.zeros((Vp, E), matmul_dtype).at[:V].set(params["embedding"].astype(matmul_dtype))

    def cat(l):
        # (in_l, 4H) ; (H, 4H)  ->  (in_l + H, 4H): contraction dim leading
        return jnp.concatenate([params["w_ih"][l].T, params["w_hh"][l].T], axis=0)

    prepped = {
        "emb": emb,                                                 # (Vp, E) bf16
        "w0": cat(0).astype(matmul_dtype),                          # (E+H, 4H) bf16
        "b": jnp.stack(params["b"], axis=0).astype(jnp.float32),    # (L, 1, 4H) f32
        "w_out": params["w_out"].T.astype(matmul_dtype),            # (H, O) bf16
        "b_out": params["b_out"].astype(jnp.float32),               # (1, O) f32
    }
    if L > 1:
        prepped["w_rest"] = jnp.stack([cat(l) for l in range(1, L)],
                                      axis=0).astype(matmul_dtype)  # (L-1, 2H, 4H) bf16
    return prepped


def pack_state(hidden, cell):
    L, B, H = hidden.shape
    h = jnp.transpose(hidden, (1, 0, 2)).reshape(B, L * H)
    c = jnp.transpose(cell, (1, 0, 2)).reshape(B, L * H)
    return jnp.concatenate([h, c], axis=1)                          # (B, 2*L*H)


def unpack_state(state, L, H):
    B = state.shape[0]
    h = state[:, :L * H].reshape(B, L, H).transpose(1, 0, 2)
    c = state[:, L * H:].reshape(B, L, H).transpose(1, 0, 2)
    return h, c


@jax.jit
def decoder_rnn_decode(prepped, token_ids, state_packed):
    """Teacher-forced decode over T steps == T sequential DecoderRNN.forward calls (eval mode).

    token_ids: (T, B) int32; state_packed: (B, 2*L*H) f32 (see pack_state).
    Returns (preds (T, B, O) f32, new packed state (B, 2*L*H) f32).
    """
    T, B = token_ids.shape
    emb = prepped["emb"]
    Vp, E = emb.shape
    b = prepped["b"]
    L = b.shape[0]
    H = b.shape[2] // 4
    w_out = prepped["w_out"]
    O = w_out.shape[1]

    ids3 = token_ids.reshape(T, B, 1).astype(jnp.int32)

    inputs = [ids3, state_packed, emb, prepped["w0"]]
    in_specs = [
        pl.BlockSpec((1, B, 1), lambda t: (t, 0, 0)),               # per-step token ids
        pl.BlockSpec((B, 2 * L * H), lambda t: (0, 0)),             # initial packed state
        pl.BlockSpec(emb.shape, lambda t: (0, 0)),                  # weights below: constant
        pl.BlockSpec(prepped["w0"].shape, lambda t: (0, 0)),        # index_map -> DMA'd once,
    ]                                                               # VMEM-resident for all T
    if L > 1:
        inputs.append(prepped["w_rest"])
        in_specs.append(pl.BlockSpec(prepped["w_rest"].shape, lambda t: (0, 0, 0)))
    inputs += [b, w_out, prepped["b_out"]]
    in_specs += [
        pl.BlockSpec(b.shape, lambda t: (0, 0, 0)),
        pl.BlockSpec(w_out.shape, lambda t: (0, 0)),
        pl.BlockSpec(prepped["b_out"].shape, lambda t: (0, 0)),
    ]
    # TODO(synk): at production H / vocab sizes add a grid axis over O (TILE_O ~ 512-2048) for
    # the output projection so w_out never has to be fully VMEM-resident (v7x 64 MiB ceiling).

    out_shape = (
        jax.ShapeDtypeStruct((T, B, O), jnp.float32),               # per-step log-probs
        jax.ShapeDtypeStruct((B, 2 * L * H), jnp.float32),          # final packed [h | c]
    )
    out_specs = (
        pl.BlockSpec((1, B, O), lambda t: (t, 0, 0)),               # lane-dense (O mult of 128)
        pl.BlockSpec((B, 2 * L * H), lambda t: (0, 0)),             # resident state carry
    )

    per_step_flops = (2 * B * Vp * E + 2 * B * (E + H) * 4 * H
                      + (L - 1) * 2 * B * (2 * H) * 4 * H + 2 * B * H * O)
    in_bytes = sum(int(a.size) * a.dtype.itemsize for a in inputs)
    out_bytes = T * B * O * 4 + B * 2 * L * H * 4
    cost = pl.CostEstimate(
        flops=int(T * per_step_flops),
        transcendentals=int(T * (L * (2 * B * 4 * H + B * H) + 2 * B * O)),
        bytes_accessed=int(in_bytes + out_bytes),
    )
    vmem_limit = int(min(100 * 1024 * 1024, max(16 * 1024 * 1024, 4 * (in_bytes + out_bytes))))

    preds, new_state = pl.pallas_call(
        make_decoder_kernel(L, H, B, Vp),
        out_shape=out_shape,
        grid_spec=pltpu.PrefetchScalarGridSpec(
            num_scalar_prefetch=0,
            grid=(T,),
            in_specs=in_specs,
            out_specs=out_specs,
        ),
        compiler_params=pltpu.CompilerParams(
            dimension_semantics=("arbitrary",),      # sequential: state carried across steps
            vmem_limit_bytes=vmem_limit,
        ),
        cost_estimate=cost,
    )(*inputs)
    return preds, new_state


def decoder_rnn_forward(prepped, token_ids, hidden, cell):
    """Exact single-step equivalent of DecoderRNN.forward (eval mode).
    token_ids: (B,) int32; hidden/cell: (L, B, H) f32."""
    L, B, H = hidden.shape
    preds, new_state = decoder_rnn_decode(prepped, token_ids[None, :], pack_state(hidden, cell))
    h, c = unpack_state(new_state, L, H)
    return preds[0], h, c


def reference_decode(prepped, token_ids, hidden, cell):
    """Pure-JAX reference at matched precision (bf16 matmuls, f32 elsewhere)."""
    L = prepped["b"].shape[0]
    H = prepped["b"].shape[2] // 4
    h = [hidden[l] for l in range(L)]
    c = [cell[l] for l in range(L)]
    preds = []
    for t in range(token_ids.shape[0]):
        x = prepped["emb"][token_ids[t]].astype(jnp.float32)
        for l in range(L):
            w = prepped["w0"] if l == 0 else prepped["w_rest"][l - 1]
            xh = jnp.concatenate([x, h[l]], axis=1).astype(w.dtype)
            gates = jnp.dot(xh, w, preferred_element_type=jnp.float32) + prepped["b"][l]
            i = jax.nn.sigmoid(gates[:, :H])
            f = jax.nn.sigmoid(gates[:, H:2 * H])
            g = jnp.tanh(gates[:, 2 * H:3 * H])
            o = jax.nn.sigmoid(gates[:, 3 * H:])
            c[l] = f * c[l] + i * g
            h[l] = o * jnp.tanh(c[l])
            x = h[l]
        logits = jnp.dot(x.astype(prepped["w_out"].dtype), prepped["w_out"],
                         preferred_element_type=jnp.float32) + prepped["b_out"]
        preds.append(jax.nn.log_softmax(logits, axis=0))   # LogSoftmax(dim=1) on (1, B, O)
    return jnp.stack(preds), jnp.stack(h), jnp.stack(c)


def init_params(key, input_size, embedding_size, hidden_size, output_size, num_layers):
    k_emb, k_lstm, k_out = jax.random.split(key, 3)
    params = {}
    params["embedding"] = jax.random.normal(k_emb, (input_size, embedding_size), jnp.float32)

    bound = 1.0 / math.sqrt(hidden_size)
    w_ih, w_hh, b = [], [], []
    lkeys = jax.random.split(k_lstm, num_layers * 4)
    for l in range(num_layers):
        in_dim = embedding_size if l == 0 else hidden_size
        w_ih.append(jax.random.uniform(lkeys[4 * l + 0], (4 * hidden_size, in_dim),
                                       jnp.float32, -bound, bound))
        w_hh.append(jax.random.uniform(lkeys[4 * l + 1], (4 * hidden_size, hidden_size),
                                       jnp.float32, -bound, bound))
        b_ih = jax.random.uniform(lkeys[4 * l + 2], (4 * hidden_size,), jnp.float32, -bound, bound)
        b_hh = jax.random.uniform(lkeys[4 * l + 3], (4 * hidden_size,), jnp.float32, -bound, bound)
        b.append((b_ih + b_hh).reshape(1, 4 * hidden_size))
    params["w_ih"], params["w_hh"], params["b"] = w_ih, w_hh, b

    ko1, ko2 = jax.random.split(k_out)
    bound_out = 1.0 / math.sqrt(hidden_size)
    params["w_out"] = jax.random.uniform(ko1, (output_size, hidden_size),
                                         jnp.float32, -bound_out, bound_out)
    params["b_out"] = jax.random.uniform(ko2, (1, output_size),
                                         jnp.float32, -bound_out, bound_out)
    return params


if __name__ == "__main__":
    # vocab=100, embedding=32, hidden=32, output vocab=128, num_layers=2, batch=8, T=4 steps
    INPUT_SIZE, EMB, HID, OUT, LAYERS, BATCH, STEPS = 100, 32, 32, 128, 2, 8, 4

    key = jax.random.PRNGKey(0)
    kp, kt, kh, kc = jax.random.split(key, 4)
    params = init_params(kp, INPUT_SIZE, EMB, HID, OUT, LAYERS)

    prepped = prepare_decoder(params)     # weight prep hoisted: done ONCE, reused below

    token_ids = jax.random.randint(kt, (STEPS, BATCH), 0, INPUT_SIZE, jnp.int32)
    hidden = jax.random.normal(kh, (LAYERS, BATCH, HID), jnp.float32)
    cell = jax.random.normal(kc, (LAYERS, BATCH, HID), jnp.float32)

    # multi-step decode: one pallas_call, grid=(T,), weights stay VMEM-resident across steps
    state0 = pack_state(hidden, cell)
    preds, state_T = decoder_rnn_decode(prepped, token_ids, state0)
    jax.block_until_ready((preds, state_T))
    h_out, c_out = unpack_state(state_T, LAYERS, HID)

    preds_ref, h_ref, c_ref = reference_decode(prepped, token_ids, hidden, cell)
    assert jnp.allclose(preds, preds_ref, atol=2e-3, rtol=2e-3)
    assert jnp.allclose(h_out, h_ref, atol=2e-3, rtol=2e-3)
    assert jnp.allclose(c_out, c_ref, atol=2e-3, rtol=2e-3)

    # single-step API (== original DecoderRNN.forward signature), same kernel with T=1
    pred1, h1, c1 = decoder_rnn_forward(prepped, token_ids[0], hidden, cell)
    jax.block_until_ready((pred1, h1, c1))
    assert jnp.allclose(pred1, preds_ref[0], atol=2e-3, rtol=2e-3)

    print("KERNEL_OK")
</pallas_src>

<mosaic_0001>
module attributes {stable_mosaic.version = 11 : i64} {
  func.func @kernel(%arg0: i32, %arg1: memref<1x8x1xi32, #tpu.memory_space<vmem>>, %arg2: memref<8x128xf32, #tpu.memory_space<vmem>>, %arg3: memref<128x32xbf16, #tpu.memory_space<vmem>>, %arg4: memref<64x128xbf16, #tpu.memory_space<vmem>>, %arg5: memref<1x64x128xbf16, #tpu.memory_space<vmem>>, %arg6: memref<2x1x128xf32, #tpu.memory_space<vmem>>, %arg7: memref<32x128xbf16, #tpu.memory_space<vmem>>, %arg8: memref<1x128xf32, #tpu.memory_space<vmem>>, %arg9: memref<1x8x128xf32, #tpu.memory_space<vmem>>, %arg10: memref<8x128xf32, #tpu.memory_space<vmem>>) attributes {dimension_semantics = [#tpu.dimension_semantics<arbitrary>], iteration_bounds = array<i64: 4>, scalar_prefetch = 0 : i64, scratch_operands = 0 : i64, tpu.core_type = #tpu.core_type<tc>, window_params = [{transform_indices = @transform_0, window_bounds = array<i64: 1, 8, 1>}, {pipeline_mode = #tpu.pipeline_mode<synchronous>, transform_indices = @transform_1, window_bounds = array<i64: 8, 128>}, {pipeline_mode = #tpu.pipeline_mode<synchronous>, transform_indices = @transform_2, window_bounds = array<i64: 128, 32>}, {pipeline_mode = #tpu.pipeline_mode<synchronous>, transform_indices = @transform_3, window_bounds = array<i64: 64, 128>}, {pipeline_mode = #tpu.pipeline_mode<synchronous>, transform_indices = @transform_4, window_bounds = array<i64: 1, 64, 128>}, {pipeline_mode = #tpu.pipeline_mode<synchronous>, transform_indices = @transform_5, window_bounds = array<i64: 2, 1, 128>}, {pipeline_mode = #tpu.pipeline_mode<synchronous>, transform_indices = @transform_6, window_bounds = array<i64: 32, 128>}, {pipeline_mode = #tpu.pipeline_mode<synchronous>, transform_indices = @transform_7, window_bounds = array<i64: 1, 128>}, {transform_indices = @transform_8, window_bounds = array<i64: 1, 8, 128>}, {pipeline_mode = #tpu.pipeline_mode<synchronous>, transform_indices = @transform_9, window_bounds = array<i64: 8, 128>}]} {
    %c0_i32 = arith.constant 0 : i32
    %0 = arith.cmpi eq, %arg0, %c0_i32 : i32
    %1 = arith.extui %0 : i1 to i32
    %c0_i32_0 = arith.constant 0 : i32
    %2 = arith.cmpi ne, %1, %c0_i32_0 : i32
    scf.if %2 {
      %c0_35 = arith.constant 0 : index
      %c0_36 = arith.constant 0 : index
      %100 = vector.load %arg2[%c0_35, %c0_36] : memref<8x128xf32, #tpu.memory_space<vmem>>, vector<8x128xf32>
      %c0_37 = arith.constant 0 : index
      %c0_38 = arith.constant 0 : index
      %101 = vector.load %arg10[%c0_37, %c0_38] : memref<8x128xf32, #tpu.memory_space<vmem>>, vector<8x128xf32>
      tpu.vector_store %arg10[%c0_37, %c0_38], %100 {strides = array<i32>} : memref<8x128xf32, #tpu.memory_space<vmem>>, vector<8x128xf32>,
    } else {
    }
    %c0 = arith.constant 0 : index
    %c0_1 = arith.constant 0 : index
    %c0_2 = arith.constant 0 : index
    %3 = vector.load %arg1[%c0, %c0_1, %c0_2] : memref<1x8x1xi32, #tpu.memory_space<vmem>>, vector<1x8x1xi32>
    %4 = vector.shape_cast %3 : vector<1x8x1xi32> to vector<8x1xi32>
    %5 = tpu.iota {dimensions = array<i32: 1>} : vector<8x128xi32>
    %6 = vector.broadcast %4 : vector<8x1xi32> to vector<8x128xi32>
    %7 = arith.cmpi eq, %5, %6 : vector<8x128xi32>
    %8 = arith.extui %7 : vector<8x128xi1> to vector<8x128xi32>
    %9 = arith.sitofp %8 : vector<8x128xi32> to vector<8x128xf32>
    %10 = arith.truncf %9 : vector<8x128xf32> to vector<8x128xbf16>
    %c0_3 = arith.constant 0 : index
    %c0_4 = arith.constant 0 : index
    %11 = vector.load %arg3[%c0_3, %c0_4] : memref<128x32xbf16, #tpu.memory_space<vmem>>, vector<128x32xbf16>
    %cst = arith.constant dense<0.000000e+00> : vector<8x32xf32>
    %12 = tpu.matmul %10, %11, %cst {dimension_numbers = #tpu.dot_dimension_numbers<[1], [0], [0], [1], [0, 0, 1, 1], [], []>} : vector<8x128xbf16>, vector<128x32xbf16>, vector<8x32xf32> -> vector<8x32xf32>
    %c0_5 = arith.constant 0 : index
    %c0_6 = arith.constant 0 : index
    %13 = vector.load %arg10[%c0_5, %c0_6] : memref<8x128xf32, #tpu.memory_space<vmem>>, vector<8x128xf32>
    %14 = vector.extract_strided_slice %13 {offsets = [0, 0], sizes = [8, 32], strides = [1, 1]} : vector<8x128xf32> to vector<8x32xf32>
    %15 = vector.extract_strided_slice %13 {offsets = [0, 64], sizes = [8, 32], strides = [1, 1]} : vector<8x128xf32> to vector<8x32xf32>
    %c0_7 = arith.constant 0 : index
    %c0_8 = arith.constant 0 : index
    %16 = vector.load %arg4[%c0_7, %c0_8] : memref<64x128xbf16, #tpu.memory_space<vmem>>, vector<64x128xbf16>
    %c0_9 = arith.constant 0 : index
    %c0_10 = arith.constant 0 : index
    %c0_11 = arith.constant 0 : index
    %17 = vector.load %arg6[%c0_9, %c0_10, %c0_11] : memref<2x1x128xf32, #tpu.memory_space<vmem>>, vector<1x1x128xf32>
    %18 = vector.shape_cast %17 : vector<1x1x128xf32> to vector<1x128xf32>
    %19 = tpu.concatenate %12, %14 in 1 : vector<8x32xf32>, vector<8x32xf32> -> vector<8x64xf32>
    %20 = arith.truncf %19 : vector<8x64xf32> to vector<8x64xbf16>
    %cst_12 = arith.constant dense<0.000000e+00> : vector<8x128xf32>
    %21 = tpu.matmul %20, %16, %cst_12 {dimension_numbers = #tpu.dot_dimension_numbers<[1], [0], [0], [1], [0, 0, 1, 1], [], []>} : vector<8x64xbf16>, vector<64x128xbf16>, vector<8x128xf32> -> vector<8x128xf32>
    %22 = vector.broadcast %18 : vector<1x128xf32> to vector<8x128xf32>
    %23 = arith.addf %21, %22 : vector<8x128xf32>
    %24 = tpu.iota {dimensions = array<i32: 1>} : vector<8x128xi32>
    %c64_i32 = arith.constant 64 : i32
    %25 = vector.broadcast %c64_i32 : i32 to vector<8x128xi32>
    %26 = arith.cmpi sge, %24, %25 : vector<8x128xi32>
    %c96_i32 = arith.constant 96 : i32
    %27 = vector.broadcast %c96_i32 : i32 to vector<8x128xi32>
    %28 = arith.cmpi slt, %24, %27 : vector<8x128xi32>
    %29 = arith.andi %26, %28 : vector<8x128xi1>
    %30 = math.tanh %23 : vector<8x128xf32>
    %31 = arith.negf %23 : vector<8x128xf32>
    %32 = math.exp %31 : vector<8x128xf32>
    %cst_13 = arith.constant 1.000000e+00 : f32
    %33 = vector.broadcast %cst_13 : f32 to vector<8x128xf32>
    %34 = arith.addf %33, %32 : vector<8x128xf32>
    %35 = arith.divf %33, %34 : vector<8x128xf32>
    %36 = arith.select %29, %30, %35 : vector<8x128xi1>, vector<8x128xf32>
    %37 = vector.extract_strided_slice %36 {offsets = [0, 0], sizes = [8, 32], strides = [1, 1]} : vector<8x128xf32> to vector<8x32xf32>
    %38 = vector.extract_strided_slice %36 {offsets = [0, 32], sizes = [8, 32], strides = [1, 1]} : vector<8x128xf32> to vector<8x32xf32>
    %39 = vector.extract_strided_slice %36 {offsets = [0, 64], sizes = [8, 32], strides = [1, 1]} : vector<8x128xf32> to vector<8x32xf32>
    %40 = vector.extract_strided_slice %36 {offsets = [0, 96], sizes = [8, 32], strides = [1, 1]} : vector<8x128xf32> to vector<8x32xf32>
    %41 = arith.mulf %38, %15 : vector<8x32xf32>
    %42 = arith.mulf %37, %39 : vector<8x32xf32>
    %43 = arith.addf %41, %42 : vector<8x32xf32>
    %44 = math.tanh %43 : vector<8x32xf32>
    %45 = arith.mulf %40, %44 : vector<8x32xf32>
    %46 = vector.extract_strided_slice %13 {offsets = [0, 32], sizes = [8, 32], strides = [1, 1]} : vector<8x128xf32> to vector<8x32xf32>
    %47 = vector.extract_strided_slice %13 {offsets = [0, 96], sizes = [8, 32], strides = [1, 1]} : vector<8x128xf32> to vector<8x32xf32>
    %c0_14 = arith.constant 0 : index
    %c0_15 = arith.constant 0 : index
    %c0_16 = arith.constant 0 : index
    %48 = vector.load %arg5[%c0_14, %c0_15, %c0_16] : memref<1x64x128xbf16, #tpu.memory_space<vmem>>, vector<1x64x128xbf16>
    %49 = vector.shape_cast %48 : vector<1x64x128xbf16> to vector<64x128xbf16>
    %c1 = arith.constant 1 : index
    %c0_17 = arith.constant 0 : index
    %c0_18 = arith.constant 0 : index
    %50 = vector.load %arg6[%c1, %c0_17, %c0_18] : memref<2x1x128xf32, #tpu.memory_space<vmem>>, vector<1x1x128xf32>
    %51 = vector.shape_cast %50 : vector<1x1x128xf32> to vector<1x128xf32>
    %52 = tpu.concatenate %45, %46 in 1 : vector<8x32xf32>, vector<8x32xf32> -> vector<8x64xf32>
    %53 = arith.truncf %52 : vector<8x64xf32> to vector<8x64xbf16>
    %cst_19 = arith.constant dense<0.000000e+00> : vector<8x128xf32>
    %54 = tpu.matmul %53, %49, %cst_19 {dimension_numbers = #tpu.dot_dimension_numbers<[1], [0], [0], [1], [0, 0, 1, 1], [], []>} : vector<8x64xbf16>, vector<64x128xbf16>, vector<8x128xf32> -> vector<8x128xf32>
    %55 = vector.broadcast %51 : vector<1x128xf32> to vector<8x128xf32>
    %56 = arith.addf %54, %55 : vector<8x128xf32>
    %57 = tpu.iota {dimensions = array<i32: 1>} : vector<8x128xi32>
    %c64_i32_20 = arith.constant 64 : i32
    %58 = vector.broadcast %c64_i32_20 : i32 to vector<8x128xi32>
    %59 = arith.cmpi sge, %57, %58 : vector<8x128xi32>
    %c96_i32_21 = arith.constant 96 : i32
    %60 = vector.broadcast %c96_i32_21 : i32 to vector<8x128xi32>
    %61 = arith.cmpi slt, %57, %60 : vector<8x128xi32>
    %62 = arith.andi %59, %61 : vector<8x128xi1>
    %63 = math.tanh %56 : vector<8x128xf32>
    %64 = arith.negf %56 : vector<8x128xf32>
    %65 = math.exp %64 : vector<8x128xf32>
    %cst_22 = arith.constant 1.000000e+00 : f32
    %66 = vector.broadcast %cst_22 : f32 to vector<8x128xf32>
    %67 = arith.addf %66, %65 : vector<8x128xf32>
    %68 = arith.divf %66, %67 : vector<8x128xf32>
    %69 = arith.select %62, %63, %68 : vector<8x128xi1>, vector<8x128xf32>
    %70 = vector.extract_strided_slice %69 {offsets = [0, 0], sizes = [8, 32], strides = [1, 1]} : vector<8x128xf32> to vector<8x32xf32>
    %71 = vector.extract_strided_slice %69 {offsets = [0, 32], sizes = [8, 32], strides = [1, 1]} : vector<8x128xf32> to vector<8x32xf32>
    %72 = vector.extract_strided_slice %69 {offsets = [0, 64], sizes = [8, 32], strides = [1, 1]} : vector<8x128xf32> to vector<8x32xf32>
    %73 = vector.extract_strided_slice %69 {offsets = [0, 96], sizes = [8, 32], strides = [1, 1]} : vector<8x128xf32> to vector<8x32xf32>
    %74 = arith.mulf %71, %47 : vector<8x32xf32>
    %75 = arith.mulf %70, %72 : vector<8x32xf32>
    %76 = arith.addf %74, %75 : vector<8x32xf32>
    %77 = math.tanh %76 : vector<8x32xf32>
    %78 = arith.mulf %73, %77 : vector<8x32xf32>
    %79 = tpu.concatenate %45, %78, %43, %76 in 1 : vector<8x32xf32>, vector<8x32xf32>, vector<8x32xf32>, vector<8x32xf32> -> vector<8x128xf32>
    %c0_23 = arith.constant 0 : index
    %c0_24 = arith.constant 0 : index
    %80 = vector.load %arg10[%c0_23, %c0_24] : memref<8x128xf32, #tpu.memory_space<vmem>>, vector<8x128xf32>
    tpu.vector_store %arg10[%c0_23, %c0_24], %79 {strides = array<i32>} : memref<8x128xf32, #tpu.memory_space<vmem>>, vector<8x128xf32>,
    %81 = arith.truncf %78 : vector<8x32xf32> to vector<8x32xbf16>
    %c0_25 = arith.constant 0 : index
    %c0_26 = arith.constant 0 : index
    %82 = vector.load %arg7[%c0_25, %c0_26] : memref<32x128xbf16, #tpu.memory_space<vmem>>, vector<32x128xbf16>
    %cst_27 = arith.constant dense<0.000000e+00> : vector<8x128xf32>
    %83 = tpu.matmul %81, %82, %cst_27 {dimension_numbers = #tpu.dot_dimension_numbers<[1], [0], [0], [1], [0, 0, 1, 1], [], []>} : vector<8x32xbf16>, vector<32x128xbf16>, vector<8x128xf32> -> vector<8x128xf32>
    %c0_28 = arith.constant 0 : index
    %c0_29 = arith.constant 0 : index
    %84 = vector.load %arg8[%c0_28, %c0_29] : memref<1x128xf32, #tpu.memory_space<vmem>>, vector<1x128xf32>
    %85 = vector.broadcast %84 : vector<1x128xf32> to vector<8x128xf32>
    %86 = arith.addf %83, %85 : vector<8x128xf32>
    %cst_30 = arith.constant dense<0xFF800000> : vector<128xf32>
    %87 = vector.multi_reduction <maximumf>, %86, %cst_30 [0] : vector<8x128xf32> to vector<128xf32>
    %88 = vector.shape_cast %87 : vector<128xf32> to vector<1x128xf32>
    %89 = vector.broadcast %88 : vector<1x128xf32> to vector<8x128xf32>
    %90 = arith.subf %86, %89 : vector<8x128xf32>
    %91 = math.exp %90 : vector<8x128xf32>
    %cst_31 = arith.constant dense<0.000000e+00> : vector<128xf32>
    %92 = vector.multi_reduction <add>, %91, %cst_31 [0] : vector<8x128xf32> to vector<128xf32>
    %93 = vector.shape_cast %92 : vector<128xf32> to vector<1x128xf32>
    %94 = math.log %93 : vector<1x128xf32>
    %95 = vector.broadcast %94 : vector<1x128xf32> to vector<8x128xf32>
    %96 = arith.subf %90, %95 : vector<8x128xf32>
    %c0_32 = arith.constant 0 : index
    %c0_33 = arith.constant 0 : index
    %c0_34 = arith.constant 0 : index
    %97 = vector.load %arg9[%c0_32, %c0_33, %c0_34] : memref<1x8x128xf32, #tpu.memory_space<vmem>>, vector<1x8x128xf32>
    %98 = vector.shape_cast %97 : vector<1x8x128xf32> to vector<8x128xf32>
    %99 = vector.shape_cast %96 : vector<8x128xf32> to vector<1x8x128xf32>
    tpu.vector_store %arg9[%c0_32, %c0_33, %c0_34], %99 {strides = array<i32>} : memref<1x8x128xf32, #tpu.memory_space<vmem>>, vector<1x8x128xf32>,
    return
  }
  func.func @transform_0(%arg0: i32) -> (i32, i32, i32) {
    %c0_i32 = arith.constant 0 : i32
    %c0_i32_0 = arith.constant 0 : i32
    %c0_i32_1 = arith.constant 0 : i32
    return %arg0, %c0_i32, %c0_i32_0 : i32, i32, i32
  }
  func.func @transform_1(%arg0: i32) -> (i32, i32) {
    %c0_i32 = arith.constant 0 : i32
    %c0_i32_0 = arith.constant 0 : i32
    %c0_i32_1 = arith.constant 0 : i32
    return %c0_i32, %c0_i32_0 : i32, i32
  }
  func.func @transform_2(%arg0: i32) -> (i32, i32) {
    %c0_i32 = arith.constant 0 : i32
    %c0_i32_0 = arith.constant 0 : i32
    %c0_i32_1 = arith.constant 0 : i32
    return %c0_i32, %c0_i32_0 : i32, i32
  }
  func.func @transform_3(%arg0: i32) -> (i32, i32) {
    %c0_i32 = arith.constant 0 : i32
    %c0_i32_0 = arith.constant 0 : i32
    %c0_i32_1 = arith.constant 0 : i32
    return %c0_i32, %c0_i32_0 : i32, i32
  }
  func.func @transform_4(%arg0: i32) -> (i32, i32, i32) {
    %c0_i32 = arith.constant 0 : i32
    %c0_i32_0 = arith.constant 0 : i32
    %c0_i32_1 = arith.constant 0 : i32
    %c0_i32_2 = arith.constant 0 : i32
    return %c0_i32, %c0_i32_0, %c0_i32_1 : i32, i32, i32
  }
  func.func @transform_5(%arg0: i32) -> (i32, i32, i32) {
    %c0_i32 = arith.constant 0 : i32
    %c0_i32_0 = arith.constant 0 : i32
    %c0_i32_1 = arith.constant 0 : i32
    %c0_i32_2 = arith.constant 0 : i32
    return %c0_i32, %c0_i32_0, %c0_i32_1 : i32, i32, i32
  }
  func.func @transform_6(%arg0: i32) -> (i32, i32) {
    %c0_i32 = arith.constant 0 : i32
    %c0_i32_0 = arith.constant 0 : i32
    %c0_i32_1 = arith.constant 0 : i32
    return %c0_i32, %c0_i32_0 : i32, i32
  }
  func.func @transform_7(%arg0: i32) -> (i32, i32) {
    %c0_i32 = arith.constant 0 : i32
    %c0_i32_0 = arith.constant 0 : i32
    %c0_i32_1 = arith.constant 0 : i32
    return %c0_i32, %c0_i32_0 : i32, i32
  }
  func.func @transform_8(%arg0: i32) -> (i32, i32, i32) {
    %c0_i32 = arith.constant 0 : i32
    %c0_i32_0 = arith.constant 0 : i32
    %c0_i32_1 = arith.constant 0 : i32
    return %arg0, %c0_i32, %c0_i32_0 : i32, i32, i32
  }
  func.func @transform_9(%arg0: i32) -> (i32, i32) {
    %c0_i32 = arith.constant 0 : i32
    %c0_i32_0 = arith.constant 0 : i32
    %c0_i32_1 = arith.constant 0 : i32
    return %c0_i32, %c0_i32_0 : i32, i32
  }
}

</mosaic_0001>

<bundles_post_ra>
// kernel: decoder_rnn_decode.1
= control target key start
LH: loop header
LB: loop body
LE: loop exit
PB: predicated region body
PF: predicated region fallthrough
CT: control target
= control target key end

     0   :  { %15 = vsyncpa [#allocation3], 0  ;;  %s1512_s0 = inlined_call_operand.vmem [shape: s32[4,8,1], index: 0, kind: input, shape index: {}]   ;;  %s1513_s1 = inlined_call_operand.vmem [shape: f32[8,128], index: 1, kind: input, shape index: {}]   ;;  %s1514_s2 = inlined_call_operand.vmem [shape: bf16[128,32], index: 2, kind: input, shape index: {}]   ;;  %s1515_s3 = inlined_call_operand.vmem [shape: bf16[64,128], index: 3, kind: input, shape index: {}]   ;;  %s1516_s4 = inlined_call_operand.vmem [shape: bf16[1,64,128], index: 4, kind: input, shape index: {}]   ;;  %s1517_s5 = inlined_call_operand.vmem [shape: f32[2,1,128], index: 5, kind: input, shape index: {}]   ;;  %s1518_s6 = inlined_call_operand.vmem [shape: bf16[32,128], index: 6, kind: input, shape index: {}]   ;;  %s1519_s7 = inlined_call_operand.vmem [shape: f32[1,128], index: 7, kind: input, shape index: {}]   ;;  %s1520_s8 = inlined_call_operand.hbm [shape: f32[4,8,128], index: 8, kind: output, shape index: {0}]   ;;  %s1521_s9 = inlined_call_operand.hbm [shape: f32[8,128], index: 9, kind: output, shape index: {1}]  }
   0x1   :  { %17 = vsyncpa [#allocation3 + $0x1], 0 }
   0x2   :  { %18 = vsyncpa [#allocation5], 0  ;;  %s1250_s30 = smov 0   ;;  %s1252_s10 = smov 0  }
   0x3   :  { %s1254_s11 = smov 0   ;;  %s1256_s12 = smov 0  }
   0x4 LB: > { %s1271_s13 = sadd.s32 4294967295, %s1189_s12   ;;  %s888_s14 = sadd.s32 4294967294, %s1189_s12   ;;  %s1189_s12 = sphi %s1256_s12, %s1531_s12   ;;  %s1185_s11 = sphi %s1254_s11, %s1530_s11   ;;  %s1181_s10 = sphi %s1252_s10, %s1529_s10   ;;  %s1177_s30 = sphi %s1250_s30, %s1528_s30  }
   0x5   : > { %s1275_s15 = sadd.s32 1, %s1189_s12   ;;  %s204_s16 = sadd.s32 1, %s1185_s11 }
   0x6   : > { %s201_s17 = ssub.s32 %s1189_s12, %s1275_s15  ;;  %p214_p0 = scmp.ne.s32.totalorder %s1185_s11, %s1181_s10 }
   0x7   : > { %p202_p1 = scmp.eq.s32.totalorder %s201_s17, 0  ;;  %p215_p2 = scmp.eq.s32.totalorder %s1271_s13, 3 }
   0x8   : > { %p220_p3 = scmp.ne.s32.totalorder %s1181_s10, %s1177_s30  ;;  %p221_p4 = scmp.eq.s32.totalorder %s888_s14, 3 }
   0x9   : > { %s1286_s18 = scalar_select %p202_p1, %s1185_s11, %s204_s16  }
   0xa   : > { %p1290_p5 = por %p215_p2, %p214_p0  ;;  %p1294_p6 = por %p221_p4, %p220_p3 }
   0xb   : > { %p891_p7 = scmp.ge.s32.totalorder %s1189_s12, 1  ;;  %p288_p8 = scmp.lt.s32.totalorder %s1189_s12, 5 }
   0xd   : > { %p289_p9 = pnand %p891_p7, %p288_p8 }
   0xe   : > { %s1522_s21 = sand.u32 (!%p289_p9), 1, %s1181_s10   ;;  %p323_p10 = scmp.lt.s32.totalorder (!%p289_p9), %s1271_s13, 3 }
   0xf   : > { %292 = sbr.rel (%p289_p9) target bundleno = 2102 (0x836), region = 52  ;;  %s1304_s22 = sshll.u32 (!%p289_p9), %s1522_s21, 3 }
  0x10   : > { %s320_s28 = scalar_lea.vmem (!%p289_p9), [#allocation2], %s1304_s22  ;;  %p894_p11 = scmp.ne.s32.totalorder (!%p289_p9), %s1271_s13, 0 }
  0x16   : > { %s324_s23 = scalar_select %p323_p10, %s1271_s13, 3 }
  0x17   : > { %331 = sbr.rel (%p894_p11) target bundleno = 30 (0x1e), region = 56  ;;  %v332_v0 = vld [vmem:[%s1513_s1] sm:$0xff] (!%p894_p11) }
  0x18   : > { %s893_s24 = sshll.u32 %s324_s23, 3  ;;  %333 = vst [vmem:[#allocation4] sm:$0xff] (!%p894_p11), %v332_v0 }
  0x19   : > { %s326_s27 = scalar_lea.vmem %s1512_s0, %s893_s24 }
  0x1e PF: > { %v334_v1 = vld [vmem:[%s326_s27] sm:$0xff]  ;;  %v1191_v3 = vmov 0   ;;  %v1192_v4 = vmov 0.0   ;;  %v1060_v5 = vld [vmem:[%s1514_s2 + $0x8] sm:$0xff]   ;;  %vm1193_vm0 = vmmov 0   ;;  %v1061_v6 = vld [vmem:[%s1514_s2 + $0x10] sm:$0xff]   ;;  %v335_v16 = vlaneseq }
  0x1f   : > { %v1059_v2 = vld [vmem:[%s1514_s2] sm:$0xff]   ;;  %1058 = vset.pattern.permute.xlu0 %v1191_v3  ;;  %953 = vmatprep.subr.bf16.mxu0 %v1192_v4  ;;  %v1332_v7 = vld [vmem:[#allocation4] sm:$0xff]  ;;  %s1194_s27 = smov 32   ;;  %v1062_v9 = vld [vmem:[%s1514_s2 + $0x18] sm:$0xff]   ;;  %v1195_v19 = vmov 1.0|1.0  }
  0x20   : > { %338 = vperm.xlu0 %1058, %v334_v1   ;;  %954 = vmatpush3.bf16.msra.mxu0 %v1059_v2  ;;  %v1067_v8 = vld [vmem:[%s1515_s3] sm:$0xff]   ;;  %v1068_v10 = vld [vmem:[%s1515_s3 + $0x8] sm:$0xff]   ;;  %v1069_v12 = vld [vmem:[%s1515_s3 + $0x10] sm:$0xff]   ;;  %v336_v17 = vand.u32 127, %v335_v16  ;;  %vm462_vm3 = vcmask 261120   ;;  %vm495_vm4 = vcmask 523264  }
  0x21   : > { %955 = vmatprep.subr.bf16.mxu0 %v1192_v4  ;;  %973 = vmatprep.subr.bf16.mxu1 %v1192_v4  ;;  %v1063_v11 = vld [vmem:[%s1514_s2 + $0x20] sm:$0xff]   ;;  %v1064_v13 = vld [vmem:[%s1514_s2 + $0x28] sm:$0xff]   ;;  %v1065_v14 = vld [vmem:[%s1514_s2 + $0x30] sm:$0xff]   ;;  %s1196_s23 = smov 64   ;;  %s1197_s24 = smov 96   ;;  %vm701_vm8 = vcmask 785408  }
  0x22   : > { %969 = vmatprep.mubr.msk.bf16.mxu0 %vm1193_vm0, %v1192_v4  ;;  %981 = vmatprep.mubr.msk.bf16.mxu1 %vm1193_vm0, %v1192_v4  ;;  %v1066_v15 = vld [vmem:[%s1514_s2 + $0x38] sm:$0xff]   ;;  %v906_v28 = vld [vmem:[%s1517_s5] ss:$0 sm:$0xff]  ;;  %vm539_vm5 = vcmp.ge.s32.totalorder %v336_v17, 64  ;;  %vm540_vm6 = vcmp.lt.s32.totalorder %v336_v17, 96  ;;  %v1072_v48 = vld [vmem:[%s1516_s4 + $0x8] sm:$0xff]  }
  0x23   : > { %974 = vmatpush3.bf16.msra.mxu1 %v1067_v8  ;;  %v1070_v20 = vld [vmem:[%s1515_s3 + $0x18] sm:$0xff]   ;;  %vm1382_vm7 = vmand %vm539_vm5, %vm540_vm6  ;;  %v1071_v47 = vld [vmem:[%s1516_s4] sm:$0xff]   ;;  %s1198_s25 = smov [#allocation4]  }
  0x24   : > { %956 = vmatpush3.bf16.msra.mxu0 %v1060_v5  ;;  %459 = vrot.lane.b32.xlu0 %v1332_v7, %s1194_s27  ;;  %v1073_v49 = vld [vmem:[%s1516_s4 + $0x10] sm:$0xff]   ;;  %v1074_v51 = vld [vmem:[%s1516_s4 + $0x18] sm:$0xff]   ;;  %v914_v57 = vld [vmem:[%s1517_s5 + $0x1] ss:$0 sm:$0xff]  ;;  %s818_s26 = sshll.u32 %s1198_s25, 4  ;;  %s819_s26 = int_to_ptr.vmem [resolvable:$true] %s818_s26 }
  0x25   : > { %957 = vmatprep.subr.bf16.mxu0 %v1192_v4  ;;  %975 = vmatprep.subr.bf16.mxu1 %v1192_v4  ;;  %p1104_p1 = scmp.lt.s32.totalorder %s819_s26, %s819_s26 }
  0x27   : > { %976 = vmatpush3.bf16.msra.mxu1 %v1068_v10 }
  0x28   : > { %958 = vmatpush3.bf16.msra.mxu0 %v1061_v6  ;;  %977 = vmatprep.subr.bf16.mxu1 %v1192_v4 }
  0x29   : > { %959 = vmatprep.subr.bf16.mxu0 %v1192_v4 }
  0x2b   : > { %978 = vmatpush3.bf16.msra.mxu1 %v1069_v12  ;;  %v1075_v12 = vld [vmem:[%s1518_s6] sm:$0xff]  }
  0x2c   : > { %960 = vmatpush3.bf16.msra.mxu0 %v1062_v9  ;;  %979 = vmatprep.subr.bf16.mxu1 %v1192_v4 }
  0x2d   : > { %961 = vmatprep.subr.bf16.mxu0 %v1192_v4 }
  0x2f   : > { %980 = vmatpush3.bf16.msra.mxu1 %v1070_v20 }
  0x30   : > { %962 = vmatpush3.bf16.msra.mxu0 %v1063_v11  ;;  %985 = vmatprep.subr.bf16.mxu1 %v1192_v4 }
  0x31   : > { %963 = vmatprep.subr.bf16.mxu0 %v1192_v4 }
  0x34   : > { %964 = vmatpush3.bf16.msra.mxu0 %v1064_v13  ;;  %v1076_v13 = vld [vmem:[%s1518_s6 + $0x8] sm:$0xff]  }
  0x35   : > { %965 = vmatprep.subr.bf16.mxu0 %v1192_v4 }
  0x38   : > { %966 = vmatpush3.bf16.msra.mxu0 %v1065_v14 }
  0x39   : > { %967 = vmatprep.subr.bf16.mxu0 %v1192_v4 }
  0x3c   : > { %968 = vmatpush3.bf16.msra.mxu0 %v1066_v15 }
  0x3d   : > { %997 = vmatprep.subr.bf16.mxu0 %v1192_v4 }
  0x9f   : > { %v339_v18 = vpop.permute.xlu0 %338 }
  0xa0   : > { %vm340_vm1 = vcmp.eq.s32.totalorder %v336_v17, %v339_v18 }
  0xa1   : > { %vm904_vm2 = vmpackc.low %vm340_vm1, %vm340_vm1 }
  0xa2   : > { %970 = vmatmul.mubr.msk.bf16.vlgmr.msra.gmra.mrb[0].mxu0 %vm904_vm2, %v1195_v19 }
  0xa3   : > { %1001 = vmatprep.mubr.msk.bf16.mxu0 %vm1193_vm0, %v1192_v4  ;;  %v460_v21 = vpop.permute.xlu0 %459  ;;  %998 = vmatpush3.bf16.msra.mxu0 %v1075_v12 }
  0xa4   : > { %999 = vmatprep.subr.bf16.mxu0 %v1192_v4 }
  0xa7   : > { %1000 = vmatpush3.bf16.msra.mxu0 %v1076_v13 }
 0x175   : > { %v442_v22 = vpop.f32.mrb[0].mxu0 }
 0x176   : > { %v463_v23 = vsel %vm462_vm3, %v442_v22, %v460_v21  ;;  %v971_v24 = vpop.f32.mrb[1].mxu0 }
 0x177   : > { %v464_v25 = vpack.c.bf16 %v463_v23, %v463_v23  ;;  %v445_v26 = vpop.f32.mrb[2].mxu0 }
 0x178   : > { %v972_v27 = vpop.f32.mrb[3].mxu0 }
 0x179   : > { %982 = vmatmul.mubr.msk.bf16.vlgmr.msra.gmra.mrb[0].mxu1 %vm495_vm4, %v464_v25 }
 0x17a   : > { %993 = vmatprep.mubr.msk.bf16.mxu1 %vm1193_vm0, %v1192_v4  ;;  %986 = vmatpush3.bf16.msra.mxu1 %v1071_v47 }
 0x17b   : > { %987 = vmatprep.subr.bf16.mxu1 %v1192_v4 }
 0x17e   : > { %988 = vmatpush3.bf16.msra.mxu1 %v1072_v48 }
 0x17f   : > { %989 = vmatprep.subr.bf16.mxu1 %v1192_v4 }
 0x182   : > { %990 = vmatpush3.bf16.msra.mxu1 %v1073_v49 }
 0x183   : > { %991 = vmatprep.subr.bf16.mxu1 %v1192_v4 }
 0x186   : > { %992 = vmatpush3.bf16.msra.mxu1 %v1074_v51 }
 0x24c   : > { %v533_v29 = vpop.f32.mrb[0].mxu1 }
 0x24d   : > { %v534_v30 = vadd.f32 %v906_v28, %v533_v29  ;;  %v983_v31 = vpop.f32.mrb[1].mxu1 }
 0x24e   : > { %v536_v32 = vpop.f32.mrb[2].mxu1 }
 0x24f   : > { %v912_v33 = vmul.f32 -1.442695, %v534_v30  ;;  %v984_v34 = vpop.f32.mrb[3].mxu1 }
 0x251   : > { %1077 = vpow2.f32 %v912_v33 }
 0x252   : > { %1079 = vtanh.f32 %v534_v30 }
 0x25b   : > { %v1078_v35 = vpop.eup %1077 }
 0x25c   : > { %v546_v36 = vadd.f32 1.0, %v1078_v35  ;;  %v1080_v38 = vpop.eup %1079 }
 0x25e   : > { %1081 = vrcp.f32 %v546_v36 }
 0x268   : > { %v1082_v39 = vpop.eup %1081 }
 0x269   : > { %v549_v40 = vsel %vm1382_vm7, %v1080_v38, %v1082_v39 }
 0x26a   : > { %555 = vrot.lane.b32.xlu1 %v549_v40, %s1196_s23 }
 0x26e   : > { %550 = vrot.lane.b32.xlu1 %v1332_v7, %s1197_s24 }
 0x2dc   : > { %v556_v41 = vpop.permute.xlu1 %555 }
 0x2dd   : > { %v558_v42 = vmul.f32 %v556_v41, %v549_v40 }
 0x2df   : > { %560 = vrot.lane.b32.xlu0 %v558_v42, %s1194_s27 }
 0x2e0   : > { %v551_v43 = vpop.permute.xlu1 %550 }
 0x2e1   : > { %v553_v44 = vmul.f32 %v551_v43, %v549_v40 }
 0x351   : > { %v561_v45 = vpop.permute.xlu0 %560 }
 0x352   : > { %v563_v46 = vadd.f32 %v561_v45, %v553_v44 }
 0x354   : > { %1083 = vtanh.f32 %v563_v46 }
 0x35e   : > { %v1084_v50 = vpop.eup %1083 }
 0x35f   : > { %566 = vrot.lane.b32.xlu1 %v1084_v50, %s1196_s23 }
 0x3d1   : > { %v567_v52 = vpop.permute.xlu1 %566 }
 0x3d2   : > { %v569_v53 = vmul.f32 %v567_v52, %v549_v40 }
 0x3d4   : > { %581 = vrot.lane.b32.xlu0 %v569_v53, %s1194_s27 }
 0x3d8   : > { %667 = vrot.lane.b32.xlu0 %v1332_v7, %s1196_s23 }
 0x446   : > { %v582_v54 = vpop.permute.xlu0 %581 }
 0x447   : > { %v584_v55 = vsel %vm462_vm3, %v582_v54, %v1332_v7 }
 0x448   : > { %v585_v56 = vpack.c.bf16 %v584_v55, %v584_v55 }
 0x44a   : > { %994 = vmatmul.mubr.msk.bf16.vlgmr.msra.gmra.mrb[4].mxu1 %vm495_vm4, %v585_v56  ;;  %v668_v8 = vpop.permute.xlu0 %667 }
 0x51d   : > { %v653_v58 = vpop.f32.mrb[4].mxu1 }
 0x51e   : > { %v654_v59 = vadd.f32 %v914_v57, %v653_v58  ;;  %v995_v60 = vpop.f32.mrb[5].mxu1 }
 0x51f   : > { %v656_v61 = vpop.f32.mrb[6].mxu1 }
 0x520   : > { %v920_v62 = vmul.f32 -1.442695, %v654_v59  ;;  %v996_v63 = vpop.f32.mrb[7].mxu1 }
 0x522   : > { %1085 = vpow2.f32 %v920_v62 }
 0x523   : > { %1087 = vtanh.f32 %v654_v59 }
 0x52c   : > { %v1086_v0 = vpop.eup %1085 }
 0x52d   : > { %v663_v1 = vadd.f32 1.0, %v1086_v0  ;;  %v1088_v2 = vpop.eup %1087 }
 0x52f   : > { %1089 = vrcp.f32 %v663_v1 }
 0x539   : > { %v1090_v3 = vpop.eup %1089 }
 0x53a   : > { %v666_v5 = vsel %vm1382_vm7, %v1088_v2, %v1090_v3 }
 0x53b   : > { %672 = vrot.lane.b32.xlu1 %v666_v5, %s1196_s23  ;;  %v670_v9 = vmul.f32 %v668_v8, %v666_v5 }
 0x5ad   : > { %v673_v6 = vpop.permute.xlu1 %672 }
 0x5ae   : > { %v675_v7 = vmul.f32 %v673_v6, %v666_v5 }
 0x5b0   : > { %677 = vrot.lane.b32.xlu1 %v675_v7, %s1194_s27 }
 0x622   : > { %v678_v10 = vpop.permute.xlu1 %677 }
 0x623   : > { %v680_v11 = vadd.f32 %v678_v10, %v670_v9 }
 0x625   : > { %1091 = vtanh.f32 %v680_v11 }
 0x62f   : > { %v1092_v14 = vpop.eup %1091 }
 0x630   : > { %683 = vrot.lane.b32.xlu0 %v1092_v14, %s1196_s23 }
 0x6a2   : > { %v684_v15 = vpop.permute.xlu0 %683 }
 0x6a3   : > { %v686_v16 = vmul.f32 %v684_v15, %v666_v5 }
 0x6a5   : > { %v704_v17 = vpack.c.bf16 %v686_v16, %v686_v16  ;;  %688 = vrot.lane.b32.xlu0 %v686_v16, %s1196_s23 }
 0x6a7   : > { %717 = vrot.lane.b32.xlu1 %v704_v17, %s1194_s27 }
 0x6a9   : > { %696 = vrot.lane.b32.xlu0 %v680_v11, %s1196_s23  ;;  %s1097_s23 = scalar_lea.vmem %s819_s26, 128 }
 0x6aa   : > { %p1098_p12 = scmp.ne.s32.totalorder %s819_s26, %s1097_s23  ;;  %p1105_p3 = scmp.lt.s32.totalorder %s1097_s23, %s1097_s23 }
 0x6ab   : > { %692 = vrot.lane.b32.xlu1 %v563_v46, %s1194_s27 }
 0x6ac   : > { %p1099_p13 = pnand %p1098_p12, %p215_p2  ;;  %p1106_p4 = por %p1105_p3, %p1104_p1 }
 0x6ae   : > { %p1100_p0 = pneg %p1099_p13 }
 0x6b0   : > { %p1107_p7 = pnand %p1106_p4, %p1100_p0 }
 0x717   : > { %v689_v18 = vpop.permute.xlu0 %688 }
 0x718   : > { %v699_v4 = vsel %vm462_vm3, %v582_v54, %v689_v18 }
 0x719   : > { %v718_v19 = vpop.permute.xlu1 %717 }
 0x71a   : > { %1002 = vmatmul.mubr.msk.bf16.vlgmr.msra.gmra.mrb[4].mxu0 %vm462_vm3, %v718_v19 }
 0x71b   : > { %v697_v21 = vpop.permute.xlu0 %696 }
 0x71d   : > { %v693_v20 = vpop.permute.xlu1 %692 }
 0x71e   : > { %v700_v22 = vsel %vm495_vm4, %v699_v4, %v693_v20 }
 0x71f   : > { %v702_v23 = vsel %vm701_vm8, %v700_v22, %v697_v21 }
 0x720   : > { %703 = vst [vmem:[#allocation4] sm:$0xff] %v702_v23 }
 0x721   : > { %1110 = shalt.err (!%p1107_p7)
}
 0x722   : > { %s1111_s14 = scalar_lea.hbm %s1521_s9, 128 }
 0x723   : > { %p1112_p8 = scmp.ne.s32.totalorder %s1521_s9, %s1111_s14  ;;  %p1117_p11 = scmp.lt.u32.totalorder %s1111_s14, %s1521_s9 }
 0x725   : > { %p1113_p9 = pnand %p1112_p8, %p215_p2 }
 0x727   : > { %p1114_p10 = pneg %p1113_p9 }
 0x729   : > { %p1119_p12 = pnand %p1117_p11, %p1114_p10 }
 0x72b   : > { %1122 = shalt.err (!%p1119_p12)
}
 0x72c   : > { %1007 = dma.vmem_to_hbm [thread:$0]  (%p215_p2), %s819_s26, 128, %s1521_s9, [#allocation5]   ;;  %v921_v24 = vld [vmem:[%s1519_s7] ss:$0 sm:$0xff] }
 0x72d   : > { %s926_s21 = sshll.u32 %s1271_s13, 7  ;;  %s807_s26 = sshll.u32 %s320_s28, 4  ;;  %s1464_s26 = int_to_ptr.vmem [resolvable:$true] %s807_s26 }
 0x72e   : > { %s1462_s17 = scalar_lea.hbm %s1520_s8, %s926_s21  ;;  %s1527_s24 = sand.u32 1, %s1181_s10  }
 0x72f   : > { %s794_s25 = scalar_lea.sflag [#allocation3], %s1527_s24  ;;  %s1123_s23 = scalar_lea.vmem %s1464_s26, 128 }
 0x730   : > { %p1124_p13 = scmp.ne.s32.totalorder %s1464_s26, %s1123_s23  ;;  %s1199_s27 = smov [#allocation2]  }
 0x731   : > { %s1127_s29 = sshll.u32 %s1199_s27, 4  ;;  %s1128_s29 = int_to_ptr.vmem [resolvable:$false] %s1127_s29 }
 0x732   : > { %p1125_p0 = pnand %p1124_p13, %p1290_p5  ;;  %s1129_s14 = scalar_lea.vmem %s1128_s29, 256 }
 0x733   : > { %p1130_p3 = scmp.lt.s32.totalorder %s1464_s26, %s1128_s29  ;;  %p1131_p4 = scmp.lt.s32.totalorder %s1129_s14, %s1123_s23 }
 0x734   : > { %p1126_p1 = pneg %p1125_p0 }
 0x735   : > { %p1132_p7 = por %p1131_p4, %p1130_p3 }
 0x737   : > { %p1133_p8 = pnand %p1132_p7, %p1126_p1 }
 0x7ed   : > { %v768_v25 = vpop.f32.mrb[4].mxu0 }
 0x7ee   : > { %v769_v26 = vadd.f32 %v921_v24, %v768_v25  ;;  %v1003_v27 = vpop.f32.mrb[5].mxu0 }
 0x7ef   : > { %v771_v28 = vpop.f32.mrb[6].mxu0 }
 0x7f0   : > { %v774_v29 = vrot.slane %v769_v26, 4  ;;  %v1004_v30 = vpop.f32.mrb[7].mxu0 }
 0x7f2   : > { %v775_v31 = vmax.f32 %v769_v26, %v774_v29 }
 0x7f4   : > { %v776_v32 = vrot.slane %v775_v31, 2 }
 0x7f6   : > { %v777_v33 = vmax.f32 %v775_v31, %v776_v32 }
 0x7f8   : > { %v778_v34 = vrot.slane %v777_v33, 1 }
 0x7fa   : > { %v779_v35 = vmax.f32 %v777_v33, %v778_v34 }
 0x7fc   : > { %v780_v36 = vsub.f32 %v769_v26, %v779_v35 }
 0x7fe   : > { %v781_v37 = vmul.f32 1.442695, %v780_v36 }
 0x800   : > { %1093 = vpow2.f32 %v781_v37 }
 0x80a   : > { %v1094_v38 = vpop.eup %1093 }
 0x80b   : > { %v783_v39 = vrot.slane %v1094_v38, 4 }
 0x80d   : > { %v784_v40 = vadd.f32 %v1094_v38, %v783_v39 }
 0x80f   : > { %v785_v41 = vrot.slane %v784_v40, 2 }
 0x811   : > { %v786_v42 = vadd.f32 %v785_v41, %v784_v40 }
 0x813   : > { %v787_v43 = vrot.slane %v786_v42, 1 }
 0x815   : > { %v788_v44 = vadd.f32 %v787_v43, %v786_v42 }
 0x817   : > { %1095 = vlog2.f32 %v788_v44 }
 0x821   : > { %v1096_v45 = vpop.eup %1095 }
 0x822   : > { %v790_v46 = vmul.f32 0.6931472, %v1096_v45 }
 0x824   : > { %v791_v47 = vsub.f32 %v780_v36, %v790_v46 }
 0x826   : > { %792 = vst [vmem:[%s320_s28] sm:$0xff] %v791_v47 }
 0x827   : > { %1136 = shalt.err (!%p1133_p8)
}
 0x828   : > { %s1137_s22 = scalar_lea.hbm %s1462_s17, 128  ;;  %s1141_s16 = scalar_lea.hbm %s1520_s8, 512 }
 0x829   : > { %p1138_p9 = scmp.ne.s32.totalorder %s1462_s17, %s1137_s22  ;;  %p1142_p12 = scmp.lt.u32.totalorder %s1462_s17, %s1520_s8 }
 0x82a   : > { %p1143_p13 = scmp.lt.u32.totalorder %s1141_s16, %s1137_s22  ;;  %p1145_p1 = scmp.lt.u32.totalorder %s1137_s22, %s1462_s17 }
 0x82b   : > { %p1139_p10 = pnand %p1138_p9, %p1290_p5 }
 0x82c   : > { %p1144_p0 = por %p1143_p13, %p1142_p12 }
 0x82d   : > { %p1140_p11 = pneg %p1139_p10 }
 0x82e   : > { %p1146_p3 = por %p1145_p1, %p1144_p0 }
 0x830   : > { %p1147_p4 = pnand %p1146_p3, %p1140_p11 }
 0x832   : > { %1150 = shalt.err (!%p1147_p4)
}
 0x833   : > { %1005 = dma.vmem_to_hbm [thread:$0]  (%p1290_p5), %s1464_s26, 128, %s1462_s17, %s794_s25  }
 0x834   : > { %1168 = dma.done.wait (%p215_p2), [#allocation5], 128  }
 0x835   : > { %1170 = vsyncadd (%p215_p2), [#allocation5], 4294967168 }
 0x836 PF: > { %p1017_p7 = scmp.ge.s32.totalorder %s1189_s12, 2  ;;  %s834_s23 = sand.u32 1, %s1177_s30  }
 0x837   : > { %s835_s29 = scalar_lea.sflag [#allocation3], %s834_s23 }
 0x838   : > { %p1012_p8 = pnand %p1017_p7, %p1294_p6 }
 0x83a   : > { %1172 = dma.done.wait (!%p1012_p8), %s835_s29, 128  }
 0x83b   : > { %1174 = vsyncadd (!%p1012_p8), %s835_s29, 4294967168  ;;  %p21_p5 = scmp.ge.s32.totalorder %s1275_s15, 6   ;;  %s1528_s30 = smov %s1181_s10 }
 0x83c   : > { %s1529_s10 = smov %s1185_s11  ;;  %s1530_s11 = smov %s1286_s18 }
 0x83d   : > { %s1531_s12 = smov %s1275_s15  ;;  %23 = sbr.rel (!%p21_p5) target bundleno = 4 (0x4), region = 100 }
 0x844   :  { %840 = vsyncpa [#allocation3], 1 }
 0x845   :  { %842 = vsyncpa [#allocation3 + $0x1], 1 }
 0x846   :  { %843 = vsyncpa [#allocation5], 1 }

</bundles_post_ra>
